<compile_context>
chip_gen: v7x
topology: tpu7x:2x2x1
jax: 0.10.0
libtpu: 0.0.40
codegen_flags: <defaults>
</compile_context>

<pallas_src>
import jax
import jax.numpy as jnp
from jax.experimental import pallas as pl
from jax.experimental.pallas import tpu as pltpu


# --------------------------------------------------------------------------- #
# Positional-encoding buffer (matches the PyTorch __init__).
# --------------------------------------------------------------------------- #
def _make_pe(input_size: int, encoding_dim: int) -> jnp.ndarray:
    """Sinusoidal positional-encoding buffer, shape (input_size, encoding_dim)."""
    position = jnp.arange(0, input_size, dtype=jnp.float32)[:, None]          # (L, 1)
    div_term = jnp.exp(
        jnp.arange(0, encoding_dim, 2, dtype=jnp.float32)
        * (-(jnp.log(jnp.float32(10000.0)) / encoding_dim))
    )                                                                          # (E/2,)
    angles = position * div_term                                               # (L, E/2)
    pe = jnp.zeros((input_size, encoding_dim), dtype=jnp.float32)
    pe = pe.at[:, 0::2].set(jnp.sin(angles))
    pe = pe.at[:, 1::2].set(jnp.cos(angles))
    return pe


# --------------------------------------------------------------------------- #
# Kernel: x block (TB, TR, 128) + pe block (TR, 128) broadcast over batch.
# --------------------------------------------------------------------------- #
def _pe_add_kernel(x_ref, pe_ref, o_ref):
    # pe is kept in float32; add in f32 and cast only the sum (matches torch's
    # promotion semantics more closely than pre-casting pe).
    o_ref[...] = (x_ref[...].astype(jnp.float32) + pe_ref[...]).astype(o_ref.dtype)


# --------------------------------------------------------------------------- #
# Tiling helpers.
# --------------------------------------------------------------------------- #
def _round_up(v: int, m: int) -> int:
    return ((v + m - 1) // m) * m


def _cdiv(a: int, b: int) -> int:
    return -(-a // b)


def _device_params():
    """(target x-block bytes, vmem_limit_bytes, tensorcores per chip) per TPU gen."""
    kind = ""
    try:
        kind = jax.devices()[0].device_kind.lower()
    except Exception:
        pass
    if "v5 lite" in kind or "v5e" in kind or "v5lite" in kind:
        # v5e scoped VMEM default is 16 MiB; ~2 MiB blocks (x+out double-buffered
        # + pe ≈ 12 MiB) stay comfortably inside it.
        return (2 << 20), (16 << 20), 1
    if "v6" in kind:
        # 512+-wide tiles already reach ~85% of HBM roofline; ~4 MiB amortizes
        # the ~0.35 us per-step overhead.  Footprint ≈ 24 MiB < 32 MiB limit.
        return (4 << 20), (32 << 20), 1
    if "7" in kind:
        # v7x: 3.2 TB/s HBM -> bigger blocks, and 2 TensorCores (prefer even
        # feature splits).  64 MiB physical VMEM; keep footprint < 32 MiB.
        return (4 << 20), (32 << 20), 2
    # Unknown generation: conservative.
    return (2 << 20), (16 << 20), 1


def _pick_tiling(B: int, R: int, itemsize: int, target_bytes: int, num_cores: int):
    """Choose (TB, TR, f_chunks, b_chunks) for x viewed as (B, R, 128).

    Budget counts one x block; the double-buffered x+out+pe footprint is
    ~6x that, which the per-generation vmem limit accommodates.
    """
    row_bytes = 128 * itemsize  # one (1, 128) lane-row of x

    # Batch tile: keep the full batch per block unless even a minimal 8-row
    # feature tile would blow the per-block budget (huge-B case).
    if B * 8 * row_bytes <= target_bytes:
        tb = B
    else:
        tb = max(1, target_bytes // (8 * row_bytes))

    # Feature-row tile: multiple of 8 (sublane-dense) rows of 128 lanes.
    budget_rows = max(8, (target_bytes // (tb * row_bytes)) // 8 * 8)

    if tb == B and budget_rows >= R:
        # Small problem: single feature chunk, no row padding, one grid step
        # per batch chunk (no pointless splitting of tiny work).
        tr, f_chunks = R, 1
    else:
        tr = min(budget_rows, _round_up(R, 8))
        f_chunks = _cdiv(R, tr)
        # v7x: prefer an even number of feature chunks so both TensorCores
        # get equal work on this DMA-bound loop.
        if num_cores == 2 and f_chunks > 1 and f_chunks % 2 == 1:
            alt_tr = max(8, _round_up(_cdiv(R, f_chunks + 1), 8))
            alt_chunks = _cdiv(R, alt_tr)
            if alt_chunks % 2 == 0:
                tr, f_chunks = alt_tr, alt_chunks

    b_chunks = _cdiv(B, tb)
    return tb, tr, f_chunks, b_chunks


# --------------------------------------------------------------------------- #
# Forward wrapper (PyTorch: x + pe[:, :, :x.size(2)]).
# --------------------------------------------------------------------------- #
def positional_encoding_forward(x: jnp.ndarray, pe: jnp.ndarray) -> jnp.ndarray:
    """x: (B, L, D) with L == pe.shape[0] and D <= pe.shape[1]. Returns x + pe[:L, :D]."""
    B, L, D = x.shape
    pe_sliced = pe[:L, :D].astype(jnp.float32)       # pe buffer stays f32
    F = L * D
    itemsize = jnp.dtype(x.dtype).itemsize

    target_bytes, vmem_limit, num_cores = _device_params()

    R = _cdiv(F, 128)                                  # lane-rows after padding F to 128
    TB, TR, f_chunks, b_chunks = _pick_tiling(B, R, itemsize, target_bytes, num_cores)
    Rp = TR * f_chunks                                 # padded row count
    Fp = Rp * 128                                      # padded feature count
    Bp = TB * b_chunks                                 # padded batch count

    # ---- wrapper-side layout plumbing (no-ops when shapes are already aligned)
    x_flat = x.reshape(B, F)
    if Fp > F:
        x_flat = jnp.pad(x_flat, ((0, 0), (0, Fp - F)))
    if Bp > B:
        x_flat = jnp.pad(x_flat, ((0, Bp - B), (0, 0)))
    x3 = x_flat.reshape(Bp, Rp, 128)

    pe_flat = pe_sliced.reshape(F)
    if Fp > F:
        pe_flat = jnp.pad(pe_flat, (0, Fp - F))
    pe3 = pe_flat.reshape(Rp, 128)

    # ---- lane/sublane-dense broadcast-add kernel
    out3 = pl.pallas_call(
        _pe_add_kernel,
        out_shape=jax.ShapeDtypeStruct((Bp, Rp, 128), x.dtype),
        grid_spec=pltpu.PrefetchScalarGridSpec(
            num_scalar_prefetch=0,
            grid=(f_chunks, b_chunks),                 # batch innermost -> pe tile reused
            in_specs=[
                pl.BlockSpec((TB, TR, 128), lambda f, b: (b, f, 0)),   # x slab
                pl.BlockSpec((TR, 128), lambda f, b: (f, 0)),          # pe slice (b-invariant)
            ],
            out_specs=pl.BlockSpec((TB, TR, 128), lambda f, b: (b, f, 0)),
        ),
        compiler_params=pltpu.CompilerParams(
            dimension_semantics=("parallel", "parallel"),
            vmem_limit_bytes=vmem_limit,
        ),
    )(x3, pe3)

    out = out3.reshape(Bp, Fp)
    if Fp > F or Bp > B:
        out = out[:B, :F]
    return out.reshape(B, L, D)


# --------------------------------------------------------------------------- #
# Self-check.
# --------------------------------------------------------------------------- #
if __name__ == "__main__":
    # Shapes consistent with the module: input_size (seq) = 16, encoding_dim = 32.
    B, L, D = 2, 16, 32
    key = jax.random.PRNGKey(0)
    x = jax.random.normal(key, (B, L, D), dtype=jnp.float32)
    pe = _make_pe(L, D)

    out = jax.block_until_ready(positional_encoding_forward(x, pe))
    ref = x + pe[None, :L, :D]
    assert out.shape == (B, L, D)
    assert jnp.allclose(out, ref, atol=1e-6), "mismatch vs reference (aligned case)"

    # Unaligned small case (L*D not a multiple of 128) exercises the pad/slice path.
    B2, L2, D2 = 3, 10, 20
    x2 = jax.random.normal(jax.random.PRNGKey(0), (B2, L2, D2), dtype=jnp.float32)
    pe2 = _make_pe(L2, D2)
    out2 = jax.block_until_ready(positional_encoding_forward(x2, pe2))
    ref2 = x2 + pe2[None, :L2, :D2]
    assert out2.shape == (B2, L2, D2)
    assert jnp.allclose(out2, ref2, atol=1e-6), "mismatch vs reference (padded case)"

    print("KERNEL_OK")
</pallas_src>

<mosaic_0001>
module attributes {stable_mosaic.version = 11 : i64} {
  func.func @_pe_add_kernel(%arg0: i32, %arg1: i32, %arg2: memref<2x4x128xf32, #tpu.memory_space<vmem>>, %arg3: memref<4x128xf32, #tpu.memory_space<vmem>>, %arg4: memref<2x4x128xf32, #tpu.memory_space<vmem>>) attributes {dimension_semantics = [#tpu.dimension_semantics<parallel>, #tpu.dimension_semantics<parallel>], iteration_bounds = array<i64: 1, 1>, scalar_prefetch = 0 : i64, scratch_operands = 0 : i64, tpu.core_type = #tpu.core_type<tc>, window_params = [{transform_indices = @transform_0, window_bounds = array<i64: 2, 4, 128>}, {transform_indices = @transform_1, window_bounds = array<i64: 4, 128>}, {transform_indices = @transform_2, window_bounds = array<i64: 2, 4, 128>}]} {
    %c0 = arith.constant 0 : index
    %c0_0 = arith.constant 0 : index
    %c0_1 = arith.constant 0 : index
    %0 = vector.load %arg2[%c0, %c0_0, %c0_1] : memref<2x4x128xf32, #tpu.memory_space<vmem>>, vector<2x4x128xf32>
    %c0_2 = arith.constant 0 : index
    %c0_3 = arith.constant 0 : index
    %1 = vector.load %arg3[%c0_2, %c0_3] : memref<4x128xf32, #tpu.memory_space<vmem>>, vector<4x128xf32>
    %2 = vector.shape_cast %1 : vector<4x128xf32> to vector<1x4x128xf32>
    %3 = vector.broadcast %2 : vector<1x4x128xf32> to vector<2x4x128xf32>
    %4 = arith.addf %0, %3 : vector<2x4x128xf32>
    %c0_4 = arith.constant 0 : index
    %c0_5 = arith.constant 0 : index
    %c0_6 = arith.constant 0 : index
    %5 = vector.load %arg4[%c0_4, %c0_5, %c0_6] : memref<2x4x128xf32, #tpu.memory_space<vmem>>, vector<2x4x128xf32>
    tpu.vector_store %arg4[%c0_4, %c0_5, %c0_6], %4 {strides = array<i32>} : memref<2x4x128xf32, #tpu.memory_space<vmem>>, vector<2x4x128xf32>,
    return
  }
  func.func @transform_0(%arg0: i32, %arg1: i32) -> (i32, i32, i32) {
    %c0_i32 = arith.constant 0 : i32
    %c0_i32_0 = arith.constant 0 : i32
    return %arg1, %arg0, %c0_i32 : i32, i32, i32
  }
  func.func @transform_1(%arg0: i32, %arg1: i32) -> (i32, i32) {
    %c0_i32 = arith.constant 0 : i32
    %c0_i32_0 = arith.constant 0 : i32
    return %arg0, %c0_i32 : i32, i32
  }
  func.func @transform_2(%arg0: i32, %arg1: i32) -> (i32, i32, i32) {
    %c0_i32 = arith.constant 0 : i32
    %c0_i32_0 = arith.constant 0 : i32
    return %arg1, %arg0, %c0_i32 : i32, i32, i32
  }
}

</mosaic_0001>

<bundles_post_ra>
// kernel: tpu_custom_call.1
= control target key start
LH: loop header
LB: loop body
LE: loop exit
PB: predicated region body
PF: predicated region fallthrough
CT: control target
= control target key end

     0   :  { %7 = vsyncpa [#allocation3], 0  ;;  %s202_s0 = inlined_call_operand.hbm [shape: f32[2,4,128], index: 0, kind: input, shape index: {}]   ;;  %s203_s1 = inlined_call_operand.hbm [shape: f32[4,128], index: 1, kind: input, shape index: {}]   ;;  %s204_s2 = inlined_call_operand.hbm [shape: f32[2,4,128], index: 2, kind: output, shape index: {}]  }
   0x1   :  { %8 = vsyncpa [#allocation6], 0 }
   0x2   :  { %9 = vsyncpa [#allocation4], 0  ;;  %s140_s9 = smov [#allocation2]   ;;  %s68_s13 = scalar_lea.hbm %s202_s0, 128 }
   0x3   :  { %s15_s10 = sshll.u32 %s140_s9, 4  ;;  %p69_p0 = scmp.ne.s32.totalorder %s202_s0, %s68_s13  ;;  %s16_s10 = int_to_ptr.vmem [resolvable:$true] %s15_s10 }
   0x4   :  { %p72_p1 = scmp.lt.u32.totalorder %s68_s13, %s202_s0 }
   0x6   :  { %p74_p2 = pnand %p72_p1, %p69_p0 }
   0x8   :  { %77 = shalt.err (!%p74_p2)
}
   0x9   :  { %s78_s18 = scalar_lea.vmem %s16_s10, 128  ;;  %p83_p4 = scmp.lt.s32.totalorder %s16_s10, %s16_s10 }
   0xa   :  { %p79_p3 = scmp.ne.s32.totalorder %s16_s10, %s78_s18  ;;  %p84_p5 = scmp.lt.s32.totalorder %s78_s18, %s78_s18 }
   0xc   :  { %p85_p6 = por %p84_p5, %p83_p4 }
   0xe   :  { %p86_p7 = pnand %p85_p6, %p79_p3 }
  0x10   :  { %89 = shalt.err (!%p86_p7)
}
  0x11   :  { %s141_s19 = smov 64   ;;  %s142_s20 = smov 4  }
  0x12   :  { %21 = dma.hbm_to_vmem [thread:$0]  %s202_s0, 128, %s16_s10, [#allocation3], %s141_s19, %s141_s19, %s142_s20  }
  0x13   :  { %s143_s23 = smov [#allocation5]   ;;  %s90_s27 = scalar_lea.hbm %s203_s1, 64 }
  0x14   :  { %s28_s24 = sshll.u32 %s143_s23, 4  ;;  %p91_p8 = scmp.ne.s32.totalorder %s203_s1, %s90_s27  ;;  %s29_s24 = int_to_ptr.vmem [resolvable:$true] %s28_s24 }
  0x15   :  { %p94_p9 = scmp.lt.u32.totalorder %s90_s27, %s203_s1 }
  0x17   :  { %p96_p10 = pnand %p94_p9, %p91_p8 }
  0x19   :  { %99 = shalt.err (!%p96_p10)
}
  0x1a   :  { %s100_s4 = scalar_lea.vmem %s29_s24, 64  ;;  %p105_p12 = scmp.lt.s32.totalorder %s29_s24, %s29_s24 }
  0x1b   :  { %p101_p11 = scmp.ne.s32.totalorder %s29_s24, %s100_s4  ;;  %p106_p13 = scmp.lt.s32.totalorder %s100_s4, %s100_s4 }
  0x1d   :  { %p107_p0 = por %p106_p13, %p105_p12 }
  0x1f   :  { %p108_p1 = pnand %p107_p0, %p101_p11 }
  0x21   :  { %111 = shalt.err (!%p108_p1)
}
  0x22   :  { %31 = dma.hbm_to_vmem [thread:$0]  %s203_s1, 64, %s29_s24, [#allocation6]  }
  0x23   :  { %134 = dma.done.wait [#allocation3], 128  }
  0x24   :  { %135 = vsyncadd [#allocation3], 4294967168 }
  0x25   :  { %136 = dma.done.wait [#allocation6], 64  }
  0x26   :  { %137 = vsyncadd [#allocation6], 4294967232  ;;  %s144_s6 = smov [#allocation7]   ;;  %v38_v0 = vld [vmem:[#allocation2] sm:$0xf] }
  0x27   :  { %s50_s7 = sshll.u32 %s144_s6, 4  ;;  %v40_v1 = vld [vmem:[#allocation5] sm:$0xf]  ;;  %v39_v2 = vld [vmem:[#allocation2 + $0x4] sm:$0xf]  ;;  %s51_s7 = int_to_ptr.vmem [resolvable:$true] %s50_s7 }
  0x28   :  { %v41_v3 = vadd.f32 %v40_v1, %v38_v0  ;;  %v42_v4 = vadd.f32 %v40_v1, %v39_v2  ;;  %s112_s8 = scalar_lea.vmem %s51_s7, 128  ;;  %p117_p3 = scmp.lt.s32.totalorder %s51_s7, %s51_s7 }
  0x29   :  { %p113_p2 = scmp.ne.s32.totalorder %s51_s7, %s112_s8  ;;  %p118_p4 = scmp.lt.s32.totalorder %s112_s8, %s112_s8 }
  0x2a   :  { %43 = vst [vmem:[#allocation7] sm:$0xf] %v41_v3  ;;  %44 = vst [vmem:[#allocation7 + $0x4] sm:$0xf] %v42_v4 }
  0x2b   :  { %p119_p5 = por %p118_p4, %p117_p3 }
  0x2d   :  { %p120_p6 = pnand %p119_p5, %p113_p2 }
  0x2f   :  { %123 = shalt.err (!%p120_p6)
}
  0x30   :  { %s124_s10 = scalar_lea.hbm %s204_s2, 128 }
  0x31   :  { %p125_p7 = scmp.ne.s32.totalorder %s204_s2, %s124_s10  ;;  %p128_p8 = scmp.lt.u32.totalorder %s124_s10, %s204_s2 }
  0x33   :  { %p130_p9 = pnand %p128_p8, %p125_p7 }
  0x35   :  { %133 = shalt.err (!%p130_p9)
}
  0x36   :  { %56 = dma.vmem_to_hbm [thread:$0]  %s51_s7, 128, %s204_s2, [#allocation4], %s141_s19, %s141_s19, %s142_s20  }
  0x37   :  { %138 = dma.done.wait [#allocation4], 128  }
  0x38   :  { %139 = vsyncadd [#allocation4], 4294967168 }
  0x39   :  { %60 = vsyncpa [#allocation3], 1 }
  0x3a   :  { %61 = vsyncpa [#allocation6], 1 }
  0x3b   :  { %62 = vsyncpa [#allocation4], 1 }

</bundles_post_ra>
